<compile_context>
chip_gen: v6e
topology: v6e:2x2x1
jax: 0.10.0
libtpu: 0.0.40
codegen_flags: <defaults>
</compile_context>

<pallas_src>
import functools
import math

import jax
import jax.numpy as jnp
from jax.experimental import pallas as pl
from jax.experimental.pallas import tpu as pltpu


def _round_up(x, m):
    return (x + m - 1) // m * m


def _vmem_budget_bytes(frac=0.80):
    """Per-generation VMEM budget with ~20% headroom for compiler scratch."""
    cap = None
    try:
        info = pltpu.get_tpu_info()
        cap = getattr(info, "vmem_capacity_bytes", None)
    except Exception:
        cap = None
    if not cap:
        cap = 64 << 20  # conservative default: v7x per-TC VMEM
    return int(cap * frac)


def _bf16_eup_supported():
    """True on chips with a bf16 EUP/VPU (v6e, v7x); False on v2-v5 / unknown."""
    try:
        kind = jax.devices()[0].device_kind.lower()
    except Exception:
        return False
    if "tpu" not in kind:
        return False
    for old in ("v2", "v3", "v4", "v5"):
        if old in kind:
            return False
    return True


# ---------------------------------------------------------------------------
# Kernel: whole MLP ((Linear -> Tanh)* -> Linear) for one batch tile.
# ---------------------------------------------------------------------------
def _mlp_kernel(num_layers, low_precision_tanh, x_ref, *refs):
    """refs = [w1, b1, w2, b2, ..., wL, bL, out_ref]."""
    out_ref = refs[-1]
    h = x_ref[...]                                  # native dtype -> MXU feed
    for l in range(num_layers):
        w = refs[2 * l][...]
        b = refs[2 * l + 1][...]                    # (1, d_out), row-broadcast
        h = jnp.dot(h, w, preferred_element_type=jnp.float32)   # f32 accumulate
        h = h + b.astype(jnp.float32)
        if l < num_layers - 1:
            next_dtype = refs[2 * (l + 1)].dtype
            if low_precision_tanh and next_dtype != jnp.float32:
                # bf16 EUP (v6e/v7x): packed tanh, already in next MXU dtype.
                h = jnp.tanh(h.astype(next_dtype))
            else:
                h = jnp.tanh(h)                     # f32 EUP transcendental
                if h.dtype != next_dtype:
                    h = h.astype(next_dtype)        # keep next MXU feed native
    out_ref[...] = h.astype(out_ref.dtype)


# ---------------------------------------------------------------------------
# One-time parameter prep: lane-pad weights/biases (NOT in the per-call path).
# ---------------------------------------------------------------------------
def prepare_mlp_params(weights, biases, *, lane=128):
    """Zero-pad every feature dim to a multiple of 128 lanes (exact: padded
    rows/cols/biases are zeros, tanh(0)=0 propagates zeros)."""
    dims = [weights[0].shape[0]] + [w.shape[1] for w in weights]
    dims_p = [_round_up(d, lane) for d in dims]
    params = []
    for l, (w, b) in enumerate(zip(weights, biases)):
        w_p = jnp.pad(w, ((0, dims_p[l] - w.shape[0]),
                          (0, dims_p[l + 1] - w.shape[1])))
        b_p = jnp.pad(b, (0, dims_p[l + 1] - b.shape[0])).reshape(1, -1)
        params += [w_p, b_p]
    return {"params": tuple(params), "dims": tuple(dims), "dims_p": tuple(dims_p)}


# ---------------------------------------------------------------------------
# Forward wrapper.
# ---------------------------------------------------------------------------
def mlp_forward(x, prepped):
    params = prepped["params"]
    dims = prepped["dims"]
    dims_p = prepped["dims_p"]
    num_layers = len(params) // 2
    in_dim, out_dim = dims[0], dims[-1]

    orig_shape = x.shape
    x2 = x.reshape(-1, in_dim)
    B = x2.shape[0]
    itemsize = jnp.dtype(x.dtype).itemsize

    # Sublane-packing-aware row multiple: f32 -> 8, bf16 -> 16, int8 -> 32.
    row_mult = 8 * max(1, 4 // itemsize)

    budget = _vmem_budget_bytes()
    param_bytes = sum(int(p.size) * jnp.dtype(p.dtype).itemsize for p in params)

    # Batch tile: as large as VMEM allows after resident (single-buffered)
    # params; bigger default when layers are narrow. Always aim for >= 2 grid
    # steps so v7x's two TensorCores both get work on small/medium batches.
    per_row = 2 * (dims_p[0] + dims_p[-1]) * itemsize + 2 * max(dims_p) * 4
    avail = max(budget - param_bytes, 1 << 20)
    tile_cap = max(row_mult, (avail // (2 * per_row)) // row_mult * row_mult)
    tile_b_max = min(1024 if max(dims_p) <= 512 else 256, tile_cap)

    B_rounded = _round_up(B, row_mult)
    if B_rounded >= 2 * row_mult:
        tile_b = min(tile_b_max, _round_up(pl.cdiv(B_rounded, 2), row_mult))
    else:
        tile_b = B_rounded
    tile_b = max(tile_b, row_mult)
    Bp = _round_up(B, tile_b)
    grid = (Bp // tile_b,)

    # Per-call work: only the activation is padded (params pre-padded once).
    x_p = jnp.pad(x2, ((0, Bp - B), (0, dims_p[0] - in_dim)))

    # Advisory cost estimate from the *logical* (unpadded) dims.
    flops = 2 * B * sum(dims[l] * dims[l + 1] for l in range(num_layers))
    transcendentals = B * sum(dims[1:-1])
    bytes_accessed = (B * (in_dim + out_dim)) * itemsize + sum(
        (dims[l] * dims[l + 1] + dims[l + 1])
        * jnp.dtype(params[2 * l].dtype).itemsize for l in range(num_layers))
    cost = pl.CostEstimate(flops=int(flops),
                           transcendentals=int(transcendentals),
                           bytes_accessed=int(bytes_accessed))

    needed = (param_bytes                                      # 1x resident params
              + 2 * tile_b * (dims_p[0] + dims_p[-1]) * itemsize  # dbl-buffered i/o
              + 3 * tile_b * max(dims_p) * 4)                  # f32 intermediates
    # TODO(synk): if `needed` exceeds `budget` (very wide hidden layers), tile
    # the output-feature (N) dim per layer (inner pltpu.emit_pipeline; N-tile
    # multiples of 256 on v6e/v7x, 128 on v5e) instead of whole-weight residency.
    vmem_limit = int(budget)

    low_precision_tanh = (jnp.dtype(params[0].dtype) == jnp.bfloat16
                          and _bf16_eup_supported())
    kernel = functools.partial(_mlp_kernel, num_layers, low_precision_tanh)

    def _build_in_specs(single_buffer_params):
        specs = [pl.BlockSpec((tile_b, dims_p[0]), lambda i: (i, 0))]
        for l in range(num_layers):
            w_p, b_p = params[2 * l], params[2 * l + 1]
            if single_buffer_params:
                # Constant index_map -> single buffer: halves param VMEM use.
                specs.append(pl.BlockSpec(w_p.shape, lambda i: (0, 0),
                                          pipeline_mode=pl.Buffered(1)))
                specs.append(pl.BlockSpec(b_p.shape, lambda i: (0, 0),
                                          pipeline_mode=pl.Buffered(1)))
            else:
                specs.append(pl.BlockSpec(w_p.shape, lambda i: (0, 0)))
                specs.append(pl.BlockSpec(b_p.shape, lambda i: (0, 0)))
        return specs

    out_specs = pl.BlockSpec((tile_b, dims_p[-1]), lambda i: (i, 0))

    def _run(single_buffer_params):
        return pl.pallas_call(
            kernel,
            out_shape=jax.ShapeDtypeStruct((Bp, dims_p[-1]), x.dtype),
            grid=grid,
            in_specs=_build_in_specs(single_buffer_params),
            out_specs=out_specs,
            compiler_params=pltpu.CompilerParams(
                dimension_semantics=("parallel",),
                vmem_limit_bytes=vmem_limit,
            ),
            cost_estimate=cost,
        )(x_p, *params)

    try:
        out_p = _run(True)
    except Exception:
        # Fallback: default double-buffering if Buffered(1) is unsupported on
        # this jax/Mosaic version (costs 2x param VMEM, same numerics).
        out_p = _run(False)

    out = out_p[:B, :out_dim]
    return out.reshape(orig_shape[:-1] + (out_dim,))


# ---------------------------------------------------------------------------
# Reference + init (PyTorch-style).
# ---------------------------------------------------------------------------
def init_params(key, input_dim, hidden_dims, output_dim, dtype=jnp.float32):
    """Deterministic PyTorch-style init: U(-1/sqrt(fan_in), 1/sqrt(fan_in))."""
    dims = [input_dim] + list(hidden_dims) + [output_dim]
    weights, biases = [], []
    for d_in, d_out in zip(dims[:-1], dims[1:]):
        key, kw, kb = jax.random.split(key, 3)
        bound = 1.0 / math.sqrt(d_in)
        weights.append(jax.random.uniform(kw, (d_in, d_out), dtype,
                                          minval=-bound, maxval=bound))
        biases.append(jax.random.uniform(kb, (d_out,), dtype,
                                         minval=-bound, maxval=bound))
    return weights, biases


def mlp_reference(x, weights, biases):
    h = x
    for l, (w, b) in enumerate(zip(weights, biases)):
        h = h @ w + b
        if l < len(weights) - 1:
            h = jnp.tanh(h)
    return h


if __name__ == "__main__":
    input_dim, hidden_dims, output_dim = 8, [32, 32], 4
    batch = 16

    key = jax.random.PRNGKey(0)
    key, kx = jax.random.split(key)
    x = jax.random.normal(kx, (batch, input_dim), jnp.float32)
    weights, biases = init_params(key, input_dim, hidden_dims, output_dim)

    prepped = prepare_mlp_params(weights, biases)   # one-time param padding
    out = mlp_forward(x, prepped)
    out = jax.block_until_ready(out)

    ref = mlp_reference(x, weights, biases)
    assert out.shape == (batch, output_dim)
    # NOTE: with f32 params the result matches the f32 reference to 1e-5; for
    # bf16 params the tolerance would need to be dtype-aware.
    assert jnp.allclose(out, ref, atol=1e-5, rtol=1e-5)

    print("KERNEL_OK")
</pallas_src>

<mosaic_0001>
module attributes {stable_mosaic.version = 11 : i64} {
  func.func @_mlp_kernel(%arg0: i32, %arg1: memref<8x128xf32, #tpu.memory_space<vmem>>, %arg2: memref<128x128xf32, #tpu.memory_space<vmem>>, %arg3: memref<1x128xf32, #tpu.memory_space<vmem>>, %arg4: memref<128x128xf32, #tpu.memory_space<vmem>>, %arg5: memref<1x128xf32, #tpu.memory_space<vmem>>, %arg6: memref<128x128xf32, #tpu.memory_space<vmem>>, %arg7: memref<1x128xf32, #tpu.memory_space<vmem>>, %arg8: memref<8x128xf32, #tpu.memory_space<vmem>>) attributes {dimension_semantics = [#tpu.dimension_semantics<parallel>], iteration_bounds = array<i64: 2>, scalar_prefetch = 0 : i64, scratch_operands = 0 : i64, tpu.core_type = #tpu.core_type<tc>, window_params = [{transform_indices = @transform_0, window_bounds = array<i64: 8, 128>}, {pipeline_mode = #tpu.pipeline_mode<synchronous>, transform_indices = @transform_1, window_bounds = array<i64: 128, 128>}, {pipeline_mode = #tpu.pipeline_mode<synchronous>, transform_indices = @transform_2, window_bounds = array<i64: 1, 128>}, {pipeline_mode = #tpu.pipeline_mode<synchronous>, transform_indices = @transform_3, window_bounds = array<i64: 128, 128>}, {pipeline_mode = #tpu.pipeline_mode<synchronous>, transform_indices = @transform_4, window_bounds = array<i64: 1, 128>}, {pipeline_mode = #tpu.pipeline_mode<synchronous>, transform_indices = @transform_5, window_bounds = array<i64: 128, 128>}, {pipeline_mode = #tpu.pipeline_mode<synchronous>, transform_indices = @transform_6, window_bounds = array<i64: 1, 128>}, {transform_indices = @transform_7, window_bounds = array<i64: 8, 128>}]} {
    %c0 = arith.constant 0 : index
    %c0_0 = arith.constant 0 : index
    %0 = vector.load %arg1[%c0, %c0_0] : memref<8x128xf32, #tpu.memory_space<vmem>>, vector<8x128xf32>
    %c0_1 = arith.constant 0 : index
    %c0_2 = arith.constant 0 : index
    %1 = vector.load %arg2[%c0_1, %c0_2] : memref<128x128xf32, #tpu.memory_space<vmem>>, vector<128x128xf32>
    %c0_3 = arith.constant 0 : index
    %c0_4 = arith.constant 0 : index
    %2 = vector.load %arg3[%c0_3, %c0_4] : memref<1x128xf32, #tpu.memory_space<vmem>>, vector<1x128xf32>
    %cst = arith.constant dense<0.000000e+00> : vector<8x128xf32>
    %3 = tpu.matmul %0, %1, %cst {dimension_numbers = #tpu.dot_dimension_numbers<[1], [0], [0], [1], [0, 0, 1, 1], [], []>} : vector<8x128xf32>, vector<128x128xf32>, vector<8x128xf32> -> vector<8x128xf32>
    %4 = vector.broadcast %2 : vector<1x128xf32> to vector<8x128xf32>
    %5 = arith.addf %3, %4 : vector<8x128xf32>
    %6 = math.tanh %5 : vector<8x128xf32>
    %c0_5 = arith.constant 0 : index
    %c0_6 = arith.constant 0 : index
    %7 = vector.load %arg4[%c0_5, %c0_6] : memref<128x128xf32, #tpu.memory_space<vmem>>, vector<128x128xf32>
    %c0_7 = arith.constant 0 : index
    %c0_8 = arith.constant 0 : index
    %8 = vector.load %arg5[%c0_7, %c0_8] : memref<1x128xf32, #tpu.memory_space<vmem>>, vector<1x128xf32>
    %cst_9 = arith.constant dense<0.000000e+00> : vector<8x128xf32>
    %9 = tpu.matmul %6, %7, %cst_9 {dimension_numbers = #tpu.dot_dimension_numbers<[1], [0], [0], [1], [0, 0, 1, 1], [], []>} : vector<8x128xf32>, vector<128x128xf32>, vector<8x128xf32> -> vector<8x128xf32>
    %10 = vector.broadcast %8 : vector<1x128xf32> to vector<8x128xf32>
    %11 = arith.addf %9, %10 : vector<8x128xf32>
    %12 = math.tanh %11 : vector<8x128xf32>
    %c0_10 = arith.constant 0 : index
    %c0_11 = arith.constant 0 : index
    %13 = vector.load %arg6[%c0_10, %c0_11] : memref<128x128xf32, #tpu.memory_space<vmem>>, vector<128x128xf32>
    %c0_12 = arith.constant 0 : index
    %c0_13 = arith.constant 0 : index
    %14 = vector.load %arg7[%c0_12, %c0_13] : memref<1x128xf32, #tpu.memory_space<vmem>>, vector<1x128xf32>
    %cst_14 = arith.constant dense<0.000000e+00> : vector<8x128xf32>
    %15 = tpu.matmul %12, %13, %cst_14 {dimension_numbers = #tpu.dot_dimension_numbers<[1], [0], [0], [1], [0, 0, 1, 1], [], []>} : vector<8x128xf32>, vector<128x128xf32>, vector<8x128xf32> -> vector<8x128xf32>
    %16 = vector.broadcast %14 : vector<1x128xf32> to vector<8x128xf32>
    %17 = arith.addf %15, %16 : vector<8x128xf32>
    %c0_15 = arith.constant 0 : index
    %c0_16 = arith.constant 0 : index
    %18 = vector.load %arg8[%c0_15, %c0_16] : memref<8x128xf32, #tpu.memory_space<vmem>>, vector<8x128xf32>
    tpu.vector_store %arg8[%c0_15, %c0_16], %17 {strides = array<i32>} : memref<8x128xf32, #tpu.memory_space<vmem>>, vector<8x128xf32>,
    return
  }
  func.func @transform_0(%arg0: i32) -> (i32, i32) {
    %c0_i32 = arith.constant 0 : i32
    %c0_i32_0 = arith.constant 0 : i32
    return %arg0, %c0_i32 : i32, i32
  }
  func.func @transform_1(%arg0: i32) -> (i32, i32) {
    %c0_i32 = arith.constant 0 : i32
    %c0_i32_0 = arith.constant 0 : i32
    %c0_i32_1 = arith.constant 0 : i32
    return %c0_i32, %c0_i32_0 : i32, i32
  }
  func.func @transform_2(%arg0: i32) -> (i32, i32) {
    %c0_i32 = arith.constant 0 : i32
    %c0_i32_0 = arith.constant 0 : i32
    %c0_i32_1 = arith.constant 0 : i32
    return %c0_i32, %c0_i32_0 : i32, i32
  }
  func.func @transform_3(%arg0: i32) -> (i32, i32) {
    %c0_i32 = arith.constant 0 : i32
    %c0_i32_0 = arith.constant 0 : i32
    %c0_i32_1 = arith.constant 0 : i32
    return %c0_i32, %c0_i32_0 : i32, i32
  }
  func.func @transform_4(%arg0: i32) -> (i32, i32) {
    %c0_i32 = arith.constant 0 : i32
    %c0_i32_0 = arith.constant 0 : i32
    %c0_i32_1 = arith.constant 0 : i32
    return %c0_i32, %c0_i32_0 : i32, i32
  }
  func.func @transform_5(%arg0: i32) -> (i32, i32) {
    %c0_i32 = arith.constant 0 : i32
    %c0_i32_0 = arith.constant 0 : i32
    %c0_i32_1 = arith.constant 0 : i32
    return %c0_i32, %c0_i32_0 : i32, i32
  }
  func.func @transform_6(%arg0: i32) -> (i32, i32) {
    %c0_i32 = arith.constant 0 : i32
    %c0_i32_0 = arith.constant 0 : i32
    %c0_i32_1 = arith.constant 0 : i32
    return %c0_i32, %c0_i32_0 : i32, i32
  }
  func.func @transform_7(%arg0: i32) -> (i32, i32) {
    %c0_i32 = arith.constant 0 : i32
    %c0_i32_0 = arith.constant 0 : i32
    return %arg0, %c0_i32 : i32, i32
  }
}

module attributes {stable_mosaic.version = 11 : i64} {
  func.func @_mlp_kernel(%arg0: i32, %arg1: memref<8x128xf32, #tpu.memory_space<vmem>>, %arg2: memref<128x128xf32, #tpu.memory_space<vmem>>, %arg3: memref<1x128xf32, #tpu.memory_space<vmem>>, %arg4: memref<128x128xf32, #tpu.memory_space<vmem>>, %arg5: memref<1x128xf32, #tpu.memory_space<vmem>>, %arg6: memref<128x128xf32, #tpu.memory_space<vmem>>, %arg7: memref<1x128xf32, #tpu.memory_space<vmem>>, %arg8: memref<8x128xf32, #tpu.memory_space<vmem>>) attributes {dimension_semantics = [#tpu.dimension_semantics<parallel>], iteration_bounds = array<i64: 2>, scalar_prefetch = 0 : i64, scratch_operands = 0 : i64, tpu.core_type = #tpu.core_type<tc>, window_params = [{transform_indices = @transform_0, window_bounds = array<i64: 8, 128>}, {pipeline_mode = #tpu.pipeline_mode<synchronous>, transform_indices = @transform_1, window_bounds = array<i64: 128, 128>}, {pipeline_mode = #tpu.pipeline_mode<synchronous>, transform_indices = @transform_2, window_bounds = array<i64: 1, 128>}, {pipeline_mode = #tpu.pipeline_mode<synchronous>, transform_indices = @transform_3, window_bounds = array<i64: 128, 128>}, {pipeline_mode = #tpu.pipeline_mode<synchronous>, transform_indices = @transform_4, window_bounds = array<i64: 1, 128>}, {pipeline_mode = #tpu.pipeline_mode<synchronous>, transform_indices = @transform_5, window_bounds = array<i64: 128, 128>}, {pipeline_mode = #tpu.pipeline_mode<synchronous>, transform_indices = @transform_6, window_bounds = array<i64: 1, 128>}, {transform_indices = @transform_7, window_bounds = array<i64: 8, 128>}]} {
    %c0 = arith.constant 0 : index
    %c0_0 = arith.constant 0 : index
    %0 = vector.load %arg1[%c0, %c0_0] : memref<8x128xf32, #tpu.memory_space<vmem>>, vector<8x128xf32>
    %c0_1 = arith.constant 0 : index
    %c0_2 = arith.constant 0 : index
    %1 = vector.load %arg2[%c0_1, %c0_2] : memref<128x128xf32, #tpu.memory_space<vmem>>, vector<128x128xf32>
    %c0_3 = arith.constant 0 : index
    %c0_4 = arith.constant 0 : index
    %2 = vector.load %arg3[%c0_3, %c0_4] : memref<1x128xf32, #tpu.memory_space<vmem>>, vector<1x128xf32>
    %cst = arith.constant dense<0.000000e+00> : vector<8x128xf32>
    %3 = tpu.matmul %0, %1, %cst {dimension_numbers = #tpu.dot_dimension_numbers<[1], [0], [0], [1], [0, 0, 1, 1], [], []>} : vector<8x128xf32>, vector<128x128xf32>, vector<8x128xf32> -> vector<8x128xf32>
    %4 = vector.broadcast %2 : vector<1x128xf32> to vector<8x128xf32>
    %5 = arith.addf %3, %4 : vector<8x128xf32>
    %6 = math.tanh %5 : vector<8x128xf32>
    %c0_5 = arith.constant 0 : index
    %c0_6 = arith.constant 0 : index
    %7 = vector.load %arg4[%c0_5, %c0_6] : memref<128x128xf32, #tpu.memory_space<vmem>>, vector<128x128xf32>
    %c0_7 = arith.constant 0 : index
    %c0_8 = arith.constant 0 : index
    %8 = vector.load %arg5[%c0_7, %c0_8] : memref<1x128xf32, #tpu.memory_space<vmem>>, vector<1x128xf32>
    %cst_9 = arith.constant dense<0.000000e+00> : vector<8x128xf32>
    %9 = tpu.matmul %6, %7, %cst_9 {dimension_numbers = #tpu.dot_dimension_numbers<[1], [0], [0], [1], [0, 0, 1, 1], [], []>} : vector<8x128xf32>, vector<128x128xf32>, vector<8x128xf32> -> vector<8x128xf32>
    %10 = vector.broadcast %8 : vector<1x128xf32> to vector<8x128xf32>
    %11 = arith.addf %9, %10 : vector<8x128xf32>
    %12 = math.tanh %11 : vector<8x128xf32>
    %c0_10 = arith.constant 0 : index
    %c0_11 = arith.constant 0 : index
    %13 = vector.load %arg6[%c0_10, %c0_11] : memref<128x128xf32, #tpu.memory_space<vmem>>, vector<128x128xf32>
    %c0_12 = arith.constant 0 : index
    %c0_13 = arith.constant 0 : index
    %14 = vector.load %arg7[%c0_12, %c0_13] : memref<1x128xf32, #tpu.memory_space<vmem>>, vector<1x128xf32>
    %cst_14 = arith.constant dense<0.000000e+00> : vector<8x128xf32>
    %15 = tpu.matmul %12, %13, %cst_14 {dimension_numbers = #tpu.dot_dimension_numbers<[1], [0], [0], [1], [0, 0, 1, 1], [], []>} : vector<8x128xf32>, vector<128x128xf32>, vector<8x128xf32> -> vector<8x128xf32>
    %16 = vector.broadcast %14 : vector<1x128xf32> to vector<8x128xf32>
    %17 = arith.addf %15, %16 : vector<8x128xf32>
    %c0_15 = arith.constant 0 : index
    %c0_16 = arith.constant 0 : index
    %18 = vector.load %arg8[%c0_15, %c0_16] : memref<8x128xf32, #tpu.memory_space<vmem>>, vector<8x128xf32>
    tpu.vector_store %arg8[%c0_15, %c0_16], %17 {strides = array<i32>} : memref<8x128xf32, #tpu.memory_space<vmem>>, vector<8x128xf32>,
    return
  }
  func.func @transform_0(%arg0: i32) -> (i32, i32) {
    %c0_i32 = arith.constant 0 : i32
    %c0_i32_0 = arith.constant 0 : i32
    return %arg0, %c0_i32 : i32, i32
  }
  func.func @transform_1(%arg0: i32) -> (i32, i32) {
    %c0_i32 = arith.constant 0 : i32
    %c0_i32_0 = arith.constant 0 : i32
    %c0_i32_1 = arith.constant 0 : i32
    return %c0_i32, %c0_i32_0 : i32, i32
  }
  func.func @transform_2(%arg0: i32) -> (i32, i32) {
    %c0_i32 = arith.constant 0 : i32
    %c0_i32_0 = arith.constant 0 : i32
    %c0_i32_1 = arith.constant 0 : i32
    return %c0_i32, %c0_i32_0 : i32, i32
  }
  func.func @transform_3(%arg0: i32) -> (i32, i32) {
    %c0_i32 = arith.constant 0 : i32
    %c0_i32_0 = arith.constant 0 : i32
    %c0_i32_1 = arith.constant 0 : i32
    return %c0_i32, %c0_i32_0 : i32, i32
  }
  func.func @transform_4(%arg0: i32) -> (i32, i32) {
    %c0_i32 = arith.constant 0 : i32
    %c0_i32_0 = arith.constant 0 : i32
    %c0_i32_1 = arith.constant 0 : i32
    return %c0_i32, %c0_i32_0 : i32, i32
  }
  func.func @transform_5(%arg0: i32) -> (i32, i32) {
    %c0_i32 = arith.constant 0 : i32
    %c0_i32_0 = arith.constant 0 : i32
    %c0_i32_1 = arith.constant 0 : i32
    return %c0_i32, %c0_i32_0 : i32, i32
  }
  func.func @transform_6(%arg0: i32) -> (i32, i32) {
    %c0_i32 = arith.constant 0 : i32
    %c0_i32_0 = arith.constant 0 : i32
    %c0_i32_1 = arith.constant 0 : i32
    return %c0_i32, %c0_i32_0 : i32, i32
  }
  func.func @transform_7(%arg0: i32) -> (i32, i32) {
    %c0_i32 = arith.constant 0 : i32
    %c0_i32_0 = arith.constant 0 : i32
    return %arg0, %c0_i32 : i32, i32
  }
}

</mosaic_0001>

<bundles_post_ra>
// kernel: tpu_custom_call.1
= control target key start
LH: loop header
LB: loop body
LE: loop exit
PB: predicated region body
PF: predicated region fallthrough
CT: control target
= control target key end

     0   :  { %s1478_s0 = inlined_call_operand.hbm [shape: f32[16,128], index: 0, kind: input, shape index: {}]   ;;  %s1479_s1 = inlined_call_operand.hbm [shape: f32[128,128], index: 1, kind: input, shape index: {}]   ;;  %s1480_s2 = inlined_call_operand.vmem [shape: f32[1,128], index: 2, kind: input, shape index: {}]   ;;  %s1481_s3 = inlined_call_operand.hbm [shape: f32[128,128], index: 3, kind: input, shape index: {}]   ;;  %s1482_s4 = inlined_call_operand.vmem [shape: f32[1,128], index: 4, kind: input, shape index: {}]   ;;  %s1483_s5 = inlined_call_operand.hbm [shape: f32[128,128], index: 5, kind: input, shape index: {}]   ;;  %s1484_s6 = inlined_call_operand.vmem [shape: f32[1,128], index: 6, kind: input, shape index: {}]   ;;  %s1485_s7 = inlined_call_operand.hbm [shape: f32[16,128], index: 7, kind: output, shape index: {}]  }
   0x1   :  { %1490 = sst [smem:[#allocation15_spill]] %s1479_s1 }
   0x2   :  { %1491 = sst [smem:[#allocation16_spill]] %s1481_s3 }
   0x3   :  { %12 = vsyncpa [#allocation3], 0 }
   0x4   :  { %14 = vsyncpa [#allocation3 + $0x1], 0 }
   0x5   :  { %15 = vsyncpa [#allocation6], 0 }
   0x6   :  { %16 = vsyncpa [#allocation9], 0 }
   0x7   :  { %17 = vsyncpa [#allocation4], 0 }
   0x8   :  { %19 = vsyncpa [#allocation4 + $0x1], 0  ;;  %s1225_s24 = smov 0   ;;  %s1227_s25 = smov 0  }
   0x9   :  { %s1229_s26 = smov 0   ;;  %s1231_s27 = smov 0  }
   0xa LB: > { %s1246_s28 = sadd.s32 4294967295, %s1174_s27   ;;  %s734_s29 = sadd.s32 4294967294, %s1174_s27   ;;  %s1174_s27 = sphi %s1231_s27, %s1513_s27   ;;  %s1170_s26 = sphi %s1229_s26, %s1512_s26   ;;  %s1166_s25 = sphi %s1227_s25, %s1511_s25   ;;  %s1162_s24 = sphi %s1225_s24, %s1510_s24  }
   0xb   : > { %p45_p0 = scmp.ne.s32.totalorder %s1166_s25, %s1162_s24  ;;  %p1486_p1 = scmp.eq.s32.totalorder %s1246_s28, 0 }
   0xc   : > { %p201_p3 = scmp.eq.s32.totalorder %s734_s29, 1  ;;  %p735_p5 = scmp.ge.s32.totalorder %s1174_s27, 1 }
   0xd   : > { %p1255_p4 = por %p1486_p1, %p45_p0  ;;  %p208_p7 = scmp.lt.s32.totalorder %s1174_s27, 3 }
   0xe   : > { %p1260_p6 = por %p201_p3, %p45_p0  ;;  %s1176_s10 = smov [#allocation5]  }
   0xf   : > { %s1492_s30 = scalar_select %p1255_p4, 1, 0 }
  0x10   : > { %s1493_s8 = scalar_select %p1260_p6, 1, 0 }
  0x11   : > { %p1265_p8 = pnand %p735_p5, %p208_p7  ;;  %s220_s11 = sshll.u32 %s1176_s10, 4  ;;  %s221_s11 = int_to_ptr.vmem [resolvable:$true] %s220_s11 }
  0x12   : > { %s1177_s13 = smov [#allocation7]   ;;  %s1178_s15 = smov [#allocation8]  }
  0x13   : > { %s1494_s9 = scalar_select %p1265_p8, 1, 0 }
  0x14   : > { %p927_p9 = pneg %p1265_p8  ;;  %s236_s14 = sshll.u32 %s1177_s13, 4  ;;  %s237_s14 = int_to_ptr.vmem [resolvable:$true] %s236_s14 }
  0x15   : > { %s252_s16 = sshll.u32 %s1178_s15, 4  ;;  %s1007_s17 = scalar_lea.vmem %s221_s11, 2048  ;;  %s253_s16 = int_to_ptr.vmem [resolvable:$true] %s252_s16 }
  0x16   : > { %p1274_p11 = pnand %p927_p9, %p1486_p1  ;;  %p1008_p13 = scmp.ne.s32.totalorder %s221_s11, %s1007_s17 }
  0x17   : > { %p1015_p5 = scmp.lt.s32.totalorder %s221_s11, %s221_s11  ;;  %p1016_p7 = scmp.lt.s32.totalorder %s1007_s17, %s1007_s17 }
  0x18   : > { %p998_p12 = pneg %p1274_p11 }
  0x19   : > { %p1017_p9 = por %p1016_p7, %p1015_p5 }
  0x1a   : > { %p1010_p0 = pnand %p1008_p13, %p998_p12 }
  0x1c   : > { %p1011_p3 = pneg %p1010_p0 }
  0x1e   : > { %p1018_p10 = pnand %p1017_p9, %p1011_p3 }
  0x20   : > { %1021 = shalt.err (!%p1018_p10)
}
  0x21   : > { %s1179_s18 = smov 128   ;;  %s1180_s19 = smov 8  }
  0x22   : > { %s1496_s1 = sld [smem:[#allocation15_spill]]  ;;  %s1033_s22 = scalar_lea.vmem %s237_s14, 2048 }
  0x23   : > { %p1034_p1 = scmp.ne.s32.totalorder %s237_s14, %s1033_s22  ;;  %p1041_p2 = scmp.lt.s32.totalorder %s237_s14, %s237_s14 }
  0x24   : > { %p1042_p6 = scmp.lt.s32.totalorder %s1033_s22, %s1033_s22 }
  0x25   : > { %p1036_p13 = pnand %p1034_p1, %p998_p12 }
  0x26   : > { %p1043_p5 = por %p1042_p6, %p1041_p2 }
  0x27   : > { %p1037_p0 = pneg %p1036_p13 }
  0x28   : > { %930 = dma.hbm_to_vmem [thread:$0]  (!%p1274_p11), %s1496_s1, 2048, %s221_s11, [#allocation6], %s1179_s18, %s1179_s18, %s1180_s19  }
  0x29   : > { %p1044_p3 = pnand %p1043_p5, %p1037_p0 }
  0x2b   : > { %1047 = shalt.err (!%p1044_p3)
}
  0x2c   : > { %s1497_s3 = sld [smem:[#allocation16_spill]]  ;;  %s1059_s10 = scalar_lea.vmem %s253_s16, 2048 }
  0x2d   : > { %p1060_p10 = scmp.ne.s32.totalorder %s253_s16, %s1059_s10  ;;  %p1067_p9 = scmp.lt.s32.totalorder %s253_s16, %s253_s16 }
  0x2e   : > { %p1068_p13 = scmp.lt.s32.totalorder %s1059_s10, %s1059_s10 }
  0x2f   : > { %p1062_p7 = pnand %p1060_p10, %p998_p12 }
  0x30   : > { %p1069_p4 = por %p1068_p13, %p1067_p9 }
  0x31   : > { %p1063_p1 = pneg %p1062_p7 }
  0x32   : > { %933 = dma.hbm_to_vmem [thread:$0]  (!%p1274_p11), %s1497_s3, 2048, %s237_s14, [#allocation6], %s1179_s18, %s1179_s18, %s1180_s19  }
  0x33   : > { %p1070_p2 = pnand %p1069_p4, %p1063_p1 }
  0x35   : > { %1073 = shalt.err (!%p1070_p2)
}
  0x36   : > { %936 = dma.hbm_to_vmem [thread:$0]  (!%p1274_p11), %s1483_s5, 2048, %s253_s16, [#allocation9], %s1179_s18, %s1179_s18, %s1180_s19  }
  0x37   : > { %s1305_s14 = sadd.s32 1, %s1174_s27   ;;  %s32_s12 = sadd.s32 1, %s1170_s26 }
  0x38   : > { %s29_s15 = ssub.s32 %s1174_s27, %s1305_s14  ;;  %p39_p6 = scmp.ne.s32.totalorder %s1170_s26, %s1166_s25 }
  0x39   : > { %p30_p4 = scmp.eq.s32.totalorder %s29_s15, 0  ;;  %p40_p12 = scmp.eq.s32.totalorder %s1174_s27, 0 }
  0x3a   : > { %p948_p0 = scmp.lt.s32.totalorder %s1174_s27, 2  ;;  %p1498_p3 = scmp.eq.s32.totalorder %s1246_s28, 1 }
  0x3b   : > { %s1315_s17 = scalar_select %p30_p4, %s1170_s26, %s32_s12  }
  0x3c   : > { %p41_p5 = por %p40_p12, %p39_p6  ;;  %p1319_p10 = por %p1498_p3, %p39_p6 }
  0x3d   : > { %s269_s21 = sand.u32 1, %s1170_s26   ;;  %s741_s22 = sshll.u32 %s1174_s27, 7 }
  0x3e   : > { %s1499_s20 = scalar_select %p1319_p10, 1, 0 }
  0x3f   : > { %s740_s16 = sshll.u32 %s269_s21, 3  ;;  %s1328_s23 = scalar_lea.hbm %s1478_s0, %s741_s22 }
  0x40   : > { %s273_s29 = scalar_lea.vmem [#allocation2], %s740_s16  ;;  %p1330_p11 = pnand %p948_p0, %p41_p5 }
  0x41   : > { %s280_s10 = sshll.u32 %s273_s29, 4  ;;  %s270_s13 = scalar_lea.sflag [#allocation3], %s269_s21  ;;  %s281_s10 = int_to_ptr.vmem [resolvable:$true] %s280_s10 }
  0x42   : > { %s1074_s15 = scalar_lea.hbm %s1328_s23, 128  ;;  %p1076_p1 = pneg %p1330_p11 }
  0x43   : > { %p1075_p7 = scmp.ne.s32.totalorder %s1328_s23, %s1074_s15  ;;  %s1079_s18 = scalar_lea.hbm %s1478_s0, 256 }
  0x44   : > { %p1080_p2 = scmp.lt.s32.totalorder %s1328_s23, %s1478_s0  ;;  %p1081_p4 = scmp.lt.s32.totalorder %s1079_s18, %s1074_s15 }
  0x45   : > { %p1077_p9 = pnand %p1076_p1, %p1075_p7 }
  0x46   : > { %p1082_p6 = por %p1081_p4, %p1080_p2 }
  0x47   : > { %p1078_p13 = pneg %p1077_p9 }
  0x49   : > { %p1083_p12 = pnand %p1082_p6, %p1078_p13 }
  0x4b   : > { %1086 = shalt.err (!%p1083_p12)
}
  0x4c   : > { %s1087_s29 = scalar_lea.vmem %s281_s10, 128  ;;  %s1181_s21 = smov [#allocation2]  }
  0x4d   : > { %p1088_p0 = scmp.ne.s32.totalorder %s281_s10, %s1087_s29  ;;  %s1092_s1 = sshll.u32 %s1181_s21, 4  ;;  %s1093_s1 = int_to_ptr.vmem [resolvable:$false] %s1092_s1 }
  0x4e   : > { %s1094_s3 = scalar_lea.vmem %s1093_s1, 256  ;;  %p1095_p7 = scmp.lt.s32.totalorder %s281_s10, %s1093_s1 }
  0x4f   : > { %p1090_p5 = pnand %p1088_p0, %p1076_p1  ;;  %p1096_p9 = scmp.lt.s32.totalorder %s1094_s3, %s1087_s29 }
  0x51   : > { %p1091_p3 = pneg %p1090_p5  ;;  %p1097_p10 = por %p1096_p9, %p1095_p7 }
  0x53   : > { %p1098_p8 = pnand %p1097_p10, %p1091_p3 }
  0x55   : > { %1101 = shalt.err (!%p1098_p8)
}
  0x56   : > { %940 = dma.hbm_to_vmem [thread:$0]  (!%p1330_p11), %s1328_s23, 128, %s281_s10, %s270_s13  }
  0x57   : > { %p1501_p13 = scmp.ne.s32.totalorder %s1494_s9, 0 }
  0x58   : > { %s1351_s15 = sand.u32 (!%p1501_p13), 1, %s1166_s25   ;;  %p1502_p8 = scmp.ne.s32.totalorder (!%p1501_p13), %s1492_s30, 0 }
  0x59   : > { %289 = sbr.rel (%p1501_p13) target bundleno = 761 (0x2f9), region = 48  ;;  %s743_s12 = sshll.u32 (!%p1501_p13), %s1351_s15, 3 }
  0x5a   : > { %s292_s1 = scalar_lea.sflag (!%p1501_p13), [#allocation3], %s1351_s15  ;;  %s1357_s3 = scalar_lea.vmem (!%p1501_p13), [#allocation2], %s743_s12 }
  0x5e   : > { %1145 = dma.done.wait (%p1502_p8), %s292_s1, 128  }
  0x5f   : > { %1147 = vsyncadd (%p1502_p8), %s292_s1, 4294967168  ;;  %p1503_p10 = scmp.eq.s32.totalorder %s1246_s28, 0 }
  0x61   : > { %1149 = dma.done.wait (%p1503_p10), [#allocation6], 4096   ;;  %p1504_p11 = pmov %p1503_p10 }
  0x62   : > { %p1505_p1 = pmov %p1503_p10 }
  0x63   : > { %1151 = vsyncadd (%p1504_p11), [#allocation6], 4294963200 }
  0x64   : > { %1153 = dma.done.wait (%p1505_p1), [#allocation9], 2048   ;;  %p1506_p2 = pmov %p1505_p1 }
  0x65   : > { %v1182_v0 = vmov 0.0   ;;  %vm1183_vm0 = vmmov 0   ;;  %v354_v1 = vld [vmem:[#allocation5 + $0x78] sm:$0xff]  ;;  %v353_v2 = vld [vmem:[#allocation5 + $0x70] sm:$0xff]  ;;  %v352_v3 = vld [vmem:[#allocation5 + $0x68] sm:$0xff]  ;;  %s752_s22 = sshll.u32 %s1246_s28, 7 }
  0x66   : > { %1155 = vsyncadd (%p1506_p2), [#allocation9], 4294965248  ;;  %806 = vmatprep.subr.mxu0 %v1182_v0  ;;  %838 = vmatprep.mubr.msk.f32.mxu0 %vm1183_vm0, %v1182_v0  ;;  %v351_v4 = vld [vmem:[#allocation5 + $0x60] sm:$0xff]  ;;  %v448_v5 = vld [vmem:[#allocation7 + $0x78] sm:$0xff]  ;;  %s337_s18 = scalar_lea.vmem [#allocation10], %s743_s12  ;;  %s1441_s21 = scalar_lea.hbm %s1485_s7, %s752_s22 }
  0x67   : > { %841 = vmatprep.subr.mxu1 %v1182_v0  ;;  %873 = vmatprep.mubr.msk.f32.mxu1 %vm1183_vm0, %v1182_v0  ;;  %v350_v6 = vld [vmem:[#allocation5 + $0x58] sm:$0xff]  ;;  %v447_v7 = vld [vmem:[#allocation7 + $0x70] sm:$0xff]  ;;  %v446_v8 = vld [vmem:[#allocation7 + $0x68] sm:$0xff]  ;;  %s635_s19 = sshll.u32 %s337_s18, 4  ;;  %s622_s1 = scalar_lea.sflag [#allocation4], %s1351_s15  ;;  %s636_s19 = int_to_ptr.vmem [resolvable:$true] %s635_s19 }
  0x68   : > { %807 = vmatpush3.msra.mxu0 %v354_v1  ;;  %842 = vmatpush3.msra.mxu1 %v448_v5  ;;  %v349_v9 = vld [vmem:[#allocation5 + $0x50] sm:$0xff]  ;;  %v445_v10 = vld [vmem:[#allocation7 + $0x60] sm:$0xff]  ;;  %v348_v11 = vld [vmem:[#allocation5 + $0x48] sm:$0xff]  ;;  %p1507_p6 = scmp.ne.s32.totalorder %s1499_s20, 0  ;;  %s1184_s28 = smov [#allocation10]  }
  0x69   : > { %808 = vmatprep.subr.mxu0 %v1182_v0  ;;  %843 = vmatprep.subr.mxu1 %v1182_v0  ;;  %v444_v12 = vld [vmem:[#allocation7 + $0x58] sm:$0xff]  ;;  %v347_v13 = vld [vmem:[#allocation5 + $0x40] sm:$0xff]  ;;  %v443_v14 = vld [vmem:[#allocation7 + $0x50] sm:$0xff]  ;;  %s1106_s30 = sshll.u32 %s1184_s28, 4  ;;  %s1107_s30 = int_to_ptr.vmem [resolvable:$false] %s1106_s30 }
  0x6a   : > { %809 = vmatpush3.msra.mxu0 %v353_v2  ;;  %844 = vmatpush3.msra.mxu1 %v447_v7  ;;  %v346_v15 = vld [vmem:[#allocation5 + $0x38] sm:$0xff]  ;;  %v442_v16 = vld [vmem:[#allocation7 + $0x48] sm:$0xff]  ;;  %v345_v17 = vld [vmem:[#allocation5 + $0x30] sm:$0xff]  ;;  %s1108_s12 = scalar_lea.vmem %s1107_s30, 256  ;;  %p1109_p5 = scmp.lt.s32.totalorder %s636_s19, %s1107_s30 }
  0x6b   : > { %810 = vmatprep.subr.mxu0 %v1182_v0  ;;  %845 = vmatprep.subr.mxu1 %v1182_v0  ;;  %v344_v18 = vld [vmem:[#allocation5 + $0x28] sm:$0xff]  ;;  %v343_v19 = vld [vmem:[#allocation5 + $0x20] sm:$0xff]  ;;  %v342_v20 = vld [vmem:[#allocation5 + $0x18] sm:$0xff] }
  0x6c   : > { %811 = vmatpush3.msra.mxu0 %v352_v3  ;;  %846 = vmatpush3.msra.mxu1 %v446_v8  ;;  %v341_v21 = vld [vmem:[#allocation5 + $0x10] sm:$0xff]  ;;  %v340_v22 = vld [vmem:[#allocation5 + $0x8] sm:$0xff]  ;;  %v339_v23 = vld [vmem:[#allocation5] sm:$0xff] }
  0x6d   : > { %812 = vmatprep.subr.mxu0 %v1182_v0  ;;  %847 = vmatprep.subr.mxu1 %v1182_v0  ;;  %v338_v24 = vld [vmem:[%s1357_s3] sm:$0xff]  ;;  %v441_v25 = vld [vmem:[#allocation7 + $0x40] sm:$0xff]  ;;  %v438_v28 = vld [vmem:[#allocation7 + $0x28] sm:$0xff]  ;;  %s1102_s3 = scalar_lea.vmem %s636_s19, 128 }
  0x6e   : > { %813 = vmatpush3.msra.mxu0 %v351_v4  ;;  %848 = vmatpush3.msra.mxu1 %v445_v10  ;;  %v440_v26 = vld [vmem:[#allocation7 + $0x38] sm:$0xff]  ;;  %v439_v27 = vld [vmem:[#allocation7 + $0x30] sm:$0xff]  ;;  %v437_v29 = vld [vmem:[#allocation7 + $0x20] sm:$0xff]  ;;  %p1103_p4 = scmp.ne.s32.totalorder %s636_s19, %s1102_s3  ;;  %p1110_p3 = scmp.lt.s32.totalorder %s1108_s12, %s1102_s3 }
  0x6f   : > { %814 = vmatprep.subr.mxu0 %v1182_v0  ;;  %849 = vmatprep.subr.mxu1 %v1182_v0  ;;  %v436_v30 = vld [vmem:[#allocation7 + $0x18] sm:$0xff]  ;;  %v435_v31 = vld [vmem:[#allocation7 + $0x10] sm:$0xff]  ;;  %v434_v32 = vld [vmem:[#allocation7 + $0x8] sm:$0xff] }
  0x70   : > { %815 = vmatpush3.msra.mxu0 %v350_v6  ;;  %850 = vmatpush3.msra.mxu1 %v444_v12  ;;  %v433_v33 = vld [vmem:[#allocation7] sm:$0xff]  ;;  %v542_v34 = vld [vmem:[#allocation8 + $0x78] sm:$0xff]  ;;  %v541_v35 = vld [vmem:[#allocation8 + $0x70] sm:$0xff]  ;;  %p1104_p12 = pnand %p1103_p4, %p1507_p6  ;;  %p1111_p7 = por %p1110_p3, %p1109_p5 }
  0x71   : > { %816 = vmatprep.subr.mxu0 %v1182_v0  ;;  %851 = vmatprep.subr.mxu1 %v1182_v0  ;;  %v540_v36 = vld [vmem:[#allocation8 + $0x68] sm:$0xff]  ;;  %v539_v37 = vld [vmem:[#allocation8 + $0x60] sm:$0xff]  ;;  %v538_v38 = vld [vmem:[#allocation8 + $0x58] sm:$0xff] }
  0x72   : > { %817 = vmatpush3.msra.mxu0 %v349_v9  ;;  %852 = vmatpush3.msra.mxu1 %v443_v14  ;;  %v537_v39 = vld [vmem:[#allocation8 + $0x50] sm:$0xff]  ;;  %v536_v40 = vld [vmem:[#allocation8 + $0x48] sm:$0xff]  ;;  %v535_v46 = vld [vmem:[#allocation8 + $0x40] sm:$0xff]  ;;  %p1105_p0 = pneg %p1104_p12 }
  0x73   : > { %818 = vmatprep.subr.mxu0 %v1182_v0  ;;  %853 = vmatprep.subr.mxu1 %v1182_v0  ;;  %v748_v41 = vld [vmem:[%s1480_s2] ss:$0 sm:$0xff]  ;;  %v534_v47 = vld [vmem:[#allocation8 + $0x38] sm:$0xff]  ;;  %v532_v49 = vld [vmem:[#allocation8 + $0x28] sm:$0xff] }
  0x74   : > { %819 = vmatpush3.msra.mxu0 %v348_v11  ;;  %854 = vmatpush3.msra.mxu1 %v442_v16  ;;  %v533_v48 = vld [vmem:[#allocation8 + $0x30] sm:$0xff]  ;;  %v531_v50 = vld [vmem:[#allocation8 + $0x20] sm:$0xff]  ;;  %v530_v51 = vld [vmem:[#allocation8 + $0x18] sm:$0xff]  ;;  %p1112_p9 = pnand %p1111_p7, %p1105_p0 }
  0x75   : > { %820 = vmatprep.subr.mxu0 %v1182_v0  ;;  %855 = vmatprep.subr.mxu1 %v1182_v0  ;;  %v529_v52 = vld [vmem:[#allocation8 + $0x10] sm:$0xff]  ;;  %v528_v53 = vld [vmem:[#allocation8 + $0x8] sm:$0xff]  ;;  %v527_v54 = vld [vmem:[#allocation8] sm:$0xff] }
  0x76   : > { %821 = vmatpush3.msra.mxu0 %v347_v13  ;;  %856 = vmatpush3.msra.mxu1 %v441_v25  ;;  %v749_v55 = vld [vmem:[%s1482_s4] ss:$0 sm:$0xff] }
  0x77   : > { %822 = vmatprep.subr.mxu0 %v1182_v0  ;;  %857 = vmatprep.subr.mxu1 %v1182_v0  ;;  %v750_v60 = vld [vmem:[%s1484_s6] ss:$0 sm:$0xff] }
  0x78   : > { %823 = vmatpush3.msra.mxu0 %v346_v15  ;;  %858 = vmatpush3.msra.mxu1 %v440_v26 }
  0x79   : > { %824 = vmatprep.subr.mxu0 %v1182_v0  ;;  %859 = vmatprep.subr.mxu1 %v1182_v0 }
  0x7a   : > { %825 = vmatpush3.msra.mxu0 %v345_v17  ;;  %860 = vmatpush3.msra.mxu1 %v439_v27 }
  0x7b   : > { %826 = vmatprep.subr.mxu0 %v1182_v0  ;;  %861 = vmatprep.subr.mxu1 %v1182_v0 }
  0x7c   : > { %827 = vmatpush3.msra.mxu0 %v344_v18  ;;  %862 = vmatpush3.msra.mxu1 %v438_v28 }
  0x7d   : > { %828 = vmatprep.subr.mxu0 %v1182_v0  ;;  %863 = vmatprep.subr.mxu1 %v1182_v0 }
  0x7e   : > { %829 = vmatpush3.msra.mxu0 %v343_v19  ;;  %864 = vmatpush3.msra.mxu1 %v437_v29 }
  0x7f   : > { %830 = vmatprep.subr.mxu0 %v1182_v0  ;;  %865 = vmatprep.subr.mxu1 %v1182_v0 }
  0x80   : > { %831 = vmatpush3.msra.mxu0 %v342_v20  ;;  %866 = vmatpush3.msra.mxu1 %v436_v30 }
  0x81   : > { %832 = vmatprep.subr.mxu0 %v1182_v0  ;;  %867 = vmatprep.subr.mxu1 %v1182_v0 }
  0x82   : > { %833 = vmatpush3.msra.mxu0 %v341_v21  ;;  %868 = vmatpush3.msra.mxu1 %v435_v31 }
  0x83   : > { %834 = vmatprep.subr.mxu0 %v1182_v0  ;;  %869 = vmatprep.subr.mxu1 %v1182_v0 }
  0x84   : > { %835 = vmatpush3.msra.mxu0 %v340_v22  ;;  %870 = vmatpush3.msra.mxu1 %v434_v32 }
  0x85   : > { %836 = vmatprep.subr.mxu0 %v1182_v0  ;;  %871 = vmatprep.subr.mxu1 %v1182_v0 }
  0x86   : > { %837 = vmatpush3.msra.mxu0 %v339_v23  ;;  %872 = vmatpush3.msra.mxu1 %v433_v33 }
  0x87   : > { %839 = vmatmul.mubr.f32.vlgmr.msra.gmra.mxu0 %v338_v24  ;;  %876 = vmatprep.subr.mxu0 %v1182_v0 }
  0x88   : > { %908 = vmatprep.mubr.msk.f32.mxu0 %vm1183_vm0, %v1182_v0  ;;  %877 = vmatpush3.msra.mxu0 %v542_v34 }
  0x89   : > { %878 = vmatprep.subr.mxu0 %v1182_v0 }
  0x8a   : > { %879 = vmatpush3.msra.mxu0 %v541_v35 }
  0x8b   : > { %880 = vmatprep.subr.mxu0 %v1182_v0 }
  0x8c   : > { %881 = vmatpush3.msra.mxu0 %v540_v36 }
  0x8d   : > { %882 = vmatprep.subr.mxu0 %v1182_v0 }
  0x8e   : > { %883 = vmatpush3.msra.mxu0 %v539_v37 }
  0x8f   : > { %884 = vmatprep.subr.mxu0 %v1182_v0 }
  0x90   : > { %885 = vmatpush3.msra.mxu0 %v538_v38 }
  0x91   : > { %886 = vmatprep.subr.mxu0 %v1182_v0 }
  0x92   : > { %887 = vmatpush3.msra.mxu0 %v537_v39 }
  0x93   : > { %888 = vmatprep.subr.mxu0 %v1182_v0 }
  0x94   : > { %889 = vmatpush3.msra.mxu0 %v536_v40 }
  0x95   : > { %890 = vmatprep.subr.mxu0 %v1182_v0 }
  0x96   : > { %891 = vmatpush3.msra.mxu0 %v535_v46 }
  0x97   : > { %892 = vmatprep.subr.mxu0 %v1182_v0 }
  0x98   : > { %893 = vmatpush3.msra.mxu0 %v534_v47 }
  0x99   : > { %894 = vmatprep.subr.mxu0 %v1182_v0 }
  0x9a   : > { %895 = vmatpush3.msra.mxu0 %v533_v48 }
  0x9b   : > { %896 = vmatprep.subr.mxu0 %v1182_v0 }
  0x9c   : > { %897 = vmatpush3.msra.mxu0 %v532_v49 }
  0x9d   : > { %898 = vmatprep.subr.mxu0 %v1182_v0 }
  0x9e   : > { %899 = vmatpush3.msra.mxu0 %v531_v50 }
  0x9f   : > { %900 = vmatprep.subr.mxu0 %v1182_v0 }
  0xa0   : > { %901 = vmatpush3.msra.mxu0 %v530_v51 }
  0xa1   : > { %902 = vmatprep.subr.mxu0 %v1182_v0 }
  0xa2   : > { %903 = vmatpush3.msra.mxu0 %v529_v52 }
  0xa3   : > { %904 = vmatprep.subr.mxu0 %v1182_v0 }
  0xa4   : > { %905 = vmatpush3.msra.mxu0 %v528_v53 }
  0xa5   : > { %906 = vmatprep.subr.mxu0 %v1182_v0 }
  0xa6   : > { %907 = vmatpush3.msra.mxu0 %v527_v54 }
 0x147   : > { %v428_v42 = vpop.f32.mrf.mxu0 }
 0x148   : > { %v429_v43 = vadd.f32 %v748_v41, %v428_v42 }
 0x149   : > { %v840_v44 = vpop.f32.mrf.mxu0 }
 0x14a   : > { %992 = vtanh.f32 %v429_v43 }
 0x157   : > { %v993_v45 = vpop.eup %992 }
 0x158   : > { %874 = vmatmul.mubr.f32.vlgmr.msra.gmra.mxu1 %v993_v45 }
 0x218   : > { %v522_v56 = vpop.f32.mrf.mxu1 }
 0x219   : > { %v523_v57 = vadd.f32 %v749_v55, %v522_v56 }
 0x21a   : > { %v875_v58 = vpop.f32.mrf.mxu1 }
 0x21b   : > { %994 = vtanh.f32 %v523_v57 }
 0x228   : > { %v995_v59 = vpop.eup %994 }
 0x229   : > { %909 = vmatmul.mubr.f32.vlgmr.msra.gmra.mxu0 %v995_v59 }
 0x2e9   : > { %v616_v61 = vpop.f32.mrf.mxu0 }
 0x2ea   : > { %v617_v62 = vadd.f32 %v750_v60, %v616_v61 }
 0x2eb   : > { %v910_v63 = vpop.f32.mrf.mxu0 }
 0x2ec   : > { %620 = vst [vmem:[%s337_s18] sm:$0xff] %v617_v62 }
 0x2ed   : > { %1115 = shalt.err (!%p1112_p9)
}
 0x2ee   : > { %s1116_s9 = scalar_lea.hbm %s1441_s21, 128  ;;  %s1120_s10 = scalar_lea.hbm %s1485_s7, 256 }
 0x2ef   : > { %p1117_p13 = scmp.ne.s32.totalorder %s1441_s21, %s1116_s9  ;;  %p1121_p11 = scmp.lt.s32.totalorder %s1441_s21, %s1485_s7 }
 0x2f0   : > { %p1122_p1 = scmp.lt.s32.totalorder %s1120_s10, %s1116_s9 }
 0x2f1   : > { %p1118_p8 = pnand %p1117_p13, %p1507_p6 }
 0x2f2   : > { %p1123_p2 = por %p1122_p1, %p1121_p11 }
 0x2f3   : > { %p1119_p10 = pneg %p1118_p8 }
 0x2f5   : > { %p1124_p4 = pnand %p1123_p2, %p1119_p10 }
 0x2f7   : > { %1127 = shalt.err (!%p1124_p4)
}
 0x2f8   : > { %925 = dma.vmem_to_hbm [thread:$0]  (%p1507_p6), %s636_s19, 128, %s1441_s21, %s622_s1  }
 0x2f9 PF: > { %s647_s22 = sand.u32 1, %s1162_s24   ;;  %p1508_p12 = scmp.ne.s32.totalorder %s1493_s8, 0 }
 0x2fa   : > { %p1509_p0 = scmp.ge.s32.totalorder %s1174_s27, 2  ;;  %s648_s18 = scalar_lea.sflag [#allocation4], %s647_s22 }
 0x2fc   : > { %p942_p5 = pnand %p1509_p0, %p1508_p12 }
 0x2fe   : > { %p943_p3 = pneg %p942_p5 }
 0x300   : > { %1157 = dma.done.wait (%p943_p3), %s648_s18, 128  }
 0x301   : > { %1159 = vsyncadd (%p943_p3), %s648_s18, 4294967168  ;;  %p22_p7 = scmp.ge.s32.totalorder %s1305_s14, 4   ;;  %s1510_s24 = smov %s1166_s25 }
 0x302   : > { %s1511_s25 = smov %s1170_s26  ;;  %s1512_s26 = smov %s1315_s17 }
 0x303   : > { %s1513_s27 = smov %s1305_s14  ;;  %24 = sbr.rel (!%p22_p7) target bundleno = 10 (0xa), region = 105 }
 0x308   :  { %653 = vsyncpa [#allocation3], 1 }
 0x309   :  { %655 = vsyncpa [#allocation3 + $0x1], 1 }
 0x30a   :  { %656 = vsyncpa [#allocation6], 1 }
 0x30b   :  { %657 = vsyncpa [#allocation9], 1 }
 0x30c   :  { %658 = vsyncpa [#allocation4], 1 }
 0x30d   :  { %660 = vsyncpa [#allocation4 + $0x1], 1 }

// kernel: tpu_custom_call.1
= control target key start
LH: loop header
LB: loop body
LE: loop exit
PB: predicated region body
PF: predicated region fallthrough
CT: control target
= control target key end

     0   :  { %s1478_s0 = inlined_call_operand.hbm [shape: f32[16,128], index: 0, kind: input, shape index: {}]   ;;  %s1479_s1 = inlined_call_operand.hbm [shape: f32[128,128], index: 1, kind: input, shape index: {}]   ;;  %s1480_s2 = inlined_call_operand.vmem [shape: f32[1,128], index: 2, kind: input, shape index: {}]   ;;  %s1481_s3 = inlined_call_operand.hbm [shape: f32[128,128], index: 3, kind: input, shape index: {}]   ;;  %s1482_s4 = inlined_call_operand.vmem [shape: f32[1,128], index: 4, kind: input, shape index: {}]   ;;  %s1483_s5 = inlined_call_operand.hbm [shape: f32[128,128], index: 5, kind: input, shape index: {}]   ;;  %s1484_s6 = inlined_call_operand.vmem [shape: f32[1,128], index: 6, kind: input, shape index: {}]   ;;  %s1485_s7 = inlined_call_operand.hbm [shape: f32[16,128], index: 7, kind: output, shape index: {}]  }
   0x1   :  { %1490 = sst [smem:[#allocation15_spill]] %s1479_s1 }
   0x2   :  { %1491 = sst [smem:[#allocation16_spill]] %s1481_s3 }
   0x3   :  { %12 = vsyncpa [#allocation3], 0 }
   0x4   :  { %14 = vsyncpa [#allocation3 + $0x1], 0 }
   0x5   :  { %15 = vsyncpa [#allocation6], 0 }
   0x6   :  { %16 = vsyncpa [#allocation9], 0 }
   0x7   :  { %17 = vsyncpa [#allocation4], 0 }
   0x8   :  { %19 = vsyncpa [#allocation4 + $0x1], 0  ;;  %s1225_s24 = smov 0   ;;  %s1227_s25 = smov 0  }
   0x9   :  { %s1229_s26 = smov 0   ;;  %s1231_s27 = smov 0  }
   0xa LB: > { %s1246_s28 = sadd.s32 4294967295, %s1174_s27   ;;  %s734_s29 = sadd.s32 4294967294, %s1174_s27   ;;  %s1174_s27 = sphi %s1231_s27, %s1513_s27   ;;  %s1170_s26 = sphi %s1229_s26, %s1512_s26   ;;  %s1166_s25 = sphi %s1227_s25, %s1511_s25   ;;  %s1162_s24 = sphi %s1225_s24, %s1510_s24  }
   0xb   : > { %p45_p0 = scmp.ne.s32.totalorder %s1166_s25, %s1162_s24  ;;  %p1486_p1 = scmp.eq.s32.totalorder %s1246_s28, 0 }
   0xc   : > { %p201_p3 = scmp.eq.s32.totalorder %s734_s29, 1  ;;  %p735_p5 = scmp.ge.s32.totalorder %s1174_s27, 1 }
   0xd   : > { %p1255_p4 = por %p1486_p1, %p45_p0  ;;  %p208_p7 = scmp.lt.s32.totalorder %s1174_s27, 3 }
   0xe   : > { %p1260_p6 = por %p201_p3, %p45_p0  ;;  %s1176_s10 = smov [#allocation5]  }
   0xf   : > { %s1492_s30 = scalar_select %p1255_p4, 1, 0 }
  0x10   : > { %s1493_s8 = scalar_select %p1260_p6, 1, 0 }
  0x11   : > { %p1265_p8 = pnand %p735_p5, %p208_p7  ;;  %s220_s11 = sshll.u32 %s1176_s10, 4  ;;  %s221_s11 = int_to_ptr.vmem [resolvable:$true] %s220_s11 }
  0x12   : > { %s1177_s13 = smov [#allocation7]   ;;  %s1178_s15 = smov [#allocation8]  }
  0x13   : > { %s1494_s9 = scalar_select %p1265_p8, 1, 0 }
  0x14   : > { %p927_p9 = pneg %p1265_p8  ;;  %s236_s14 = sshll.u32 %s1177_s13, 4  ;;  %s237_s14 = int_to_ptr.vmem [resolvable:$true] %s236_s14 }
  0x15   : > { %s252_s16 = sshll.u32 %s1178_s15, 4  ;;  %s1007_s17 = scalar_lea.vmem %s221_s11, 2048  ;;  %s253_s16 = int_to_ptr.vmem [resolvable:$true] %s252_s16 }
  0x16   : > { %p1274_p11 = pnand %p927_p9, %p1486_p1  ;;  %p1008_p13 = scmp.ne.s32.totalorder %s221_s11, %s1007_s17 }
  0x17   : > { %p1015_p5 = scmp.lt.s32.totalorder %s221_s11, %s221_s11  ;;  %p1016_p7 = scmp.lt.s32.totalorder %s1007_s17, %s1007_s17 }
  0x18   : > { %p998_p12 = pneg %p1274_p11 }
  0x19   : > { %p1017_p9 = por %p1016_p7, %p1015_p5 }
  0x1a   : > { %p1010_p0 = pnand %p1008_p13, %p998_p12 }
  0x1c   : > { %p1011_p3 = pneg %p1010_p0 }
  0x1e   : > { %p1018_p10 = pnand %p1017_p9, %p1011_p3 }
  0x20   : > { %1021 = shalt.err (!%p1018_p10)
}
  0x21   : > { %s1179_s18 = smov 128   ;;  %s1180_s19 = smov 8  }
  0x22   : > { %s1496_s1 = sld [smem:[#allocation15_spill]]  ;;  %s1033_s22 = scalar_lea.vmem %s237_s14, 2048 }
  0x23   : > { %p1034_p1 = scmp.ne.s32.totalorder %s237_s14, %s1033_s22  ;;  %p1041_p2 = scmp.lt.s32.totalorder %s237_s14, %s237_s14 }
  0x24   : > { %p1042_p6 = scmp.lt.s32.totalorder %s1033_s22, %s1033_s22 }
  0x25   : > { %p1036_p13 = pnand %p1034_p1, %p998_p12 }
  0x26   : > { %p1043_p5 = por %p1042_p6, %p1041_p2 }
  0x27   : > { %p1037_p0 = pneg %p1036_p13 }
  0x28   : > { %930 = dma.hbm_to_vmem [thread:$0]  (!%p1274_p11), %s1496_s1, 2048, %s221_s11, [#allocation6], %s1179_s18, %s1179_s18, %s1180_s19  }
  0x29   : > { %p1044_p3 = pnand %p1043_p5, %p1037_p0 }
  0x2b   : > { %1047 = shalt.err (!%p1044_p3)
}
  0x2c   : > { %s1497_s3 = sld [smem:[#allocation16_spill]]  ;;  %s1059_s10 = scalar_lea.vmem %s253_s16, 2048 }
  0x2d   : > { %p1060_p10 = scmp.ne.s32.totalorder %s253_s16, %s1059_s10  ;;  %p1067_p9 = scmp.lt.s32.totalorder %s253_s16, %s253_s16 }
  0x2e   : > { %p1068_p13 = scmp.lt.s32.totalorder %s1059_s10, %s1059_s10 }
  0x2f   : > { %p1062_p7 = pnand %p1060_p10, %p998_p12 }
  0x30   : > { %p1069_p4 = por %p1068_p13, %p1067_p9 }
  0x31   : > { %p1063_p1 = pneg %p1062_p7 }
  0x32   : > { %933 = dma.hbm_to_vmem [thread:$0]  (!%p1274_p11), %s1497_s3, 2048, %s237_s14, [#allocation6], %s1179_s18, %s1179_s18, %s1180_s19  }
  0x33   : > { %p1070_p2 = pnand %p1069_p4, %p1063_p1 }
  0x35   : > { %1073 = shalt.err (!%p1070_p2)
}
  0x36   : > { %936 = dma.hbm_to_vmem [thread:$0]  (!%p1274_p11), %s1483_s5, 2048, %s253_s16, [#allocation9], %s1179_s18, %s1179_s18, %s1180_s19  }
  0x37   : > { %s1305_s14 = sadd.s32 1, %s1174_s27   ;;  %s32_s12 = sadd.s32 1, %s1170_s26 }
  0x38   : > { %s29_s15 = ssub.s32 %s1174_s27, %s1305_s14  ;;  %p39_p6 = scmp.ne.s32.totalorder %s1170_s26, %s1166_s25 }
  0x39   : > { %p30_p4 = scmp.eq.s32.totalorder %s29_s15, 0  ;;  %p40_p12 = scmp.eq.s32.totalorder %s1174_s27, 0 }
  0x3a   : > { %p948_p0 = scmp.lt.s32.totalorder %s1174_s27, 2  ;;  %p1498_p3 = scmp.eq.s32.totalorder %s1246_s28, 1 }
  0x3b   : > { %s1315_s17 = scalar_select %p30_p4, %s1170_s26, %s32_s12  }
  0x3c   : > { %p41_p5 = por %p40_p12, %p39_p6  ;;  %p1319_p10 = por %p1498_p3, %p39_p6 }
  0x3d   : > { %s269_s21 = sand.u32 1, %s1170_s26   ;;  %s741_s22 = sshll.u32 %s1174_s27, 7 }
  0x3e   : > { %s1499_s20 = scalar_select %p1319_p10, 1, 0 }
  0x3f   : > { %s740_s16 = sshll.u32 %s269_s21, 3  ;;  %s1328_s23 = scalar_lea.hbm %s1478_s0, %s741_s22 }
  0x40   : > { %s273_s29 = scalar_lea.vmem [#allocation2], %s740_s16  ;;  %p1330_p11 = pnand %p948_p0, %p41_p5 }
  0x41   : > { %s280_s10 = sshll.u32 %s273_s29, 4  ;;  %s270_s13 = scalar_lea.sflag [#allocation3], %s269_s21  ;;  %s281_s10 = int_to_ptr.vmem [resolvable:$true] %s280_s10 }
  0x42   : > { %s1074_s15 = scalar_lea.hbm %s1328_s23, 128  ;;  %p1076_p1 = pneg %p1330_p11 }
  0x43   : > { %p1075_p7 = scmp.ne.s32.totalorder %s1328_s23, %s1074_s15  ;;  %s1079_s18 = scalar_lea.hbm %s1478_s0, 256 }
  0x44   : > { %p1080_p2 = scmp.lt.s32.totalorder %s1328_s23, %s1478_s0  ;;  %p1081_p4 = scmp.lt.s32.totalorder %s1079_s18, %s1074_s15 }
  0x45   : > { %p1077_p9 = pnand %p1076_p1, %p1075_p7 }
  0x46   : > { %p1082_p6 = por %p1081_p4, %p1080_p2 }
  0x47   : > { %p1078_p13 = pneg %p1077_p9 }
  0x49   : > { %p1083_p12 = pnand %p1082_p6, %p1078_p13 }
  0x4b   : > { %1086 = shalt.err (!%p1083_p12)
}
  0x4c   : > { %s1087_s29 = scalar_lea.vmem %s281_s10, 128  ;;  %s1181_s21 = smov [#allocation2]  }
  0x4d   : > { %p1088_p0 = scmp.ne.s32.totalorder %s281_s10, %s1087_s29  ;;  %s1092_s1 = sshll.u32 %s1181_s21, 4  ;;  %s1093_s1 = int_to_ptr.vmem [resolvable:$false] %s1092_s1 }
  0x4e   : > { %s1094_s3 = scalar_lea.vmem %s1093_s1, 256  ;;  %p1095_p7 = scmp.lt.s32.totalorder %s281_s10, %s1093_s1 }
  0x4f   : > { %p1090_p5 = pnand %p1088_p0, %p1076_p1  ;;  %p1096_p9 = scmp.lt.s32.totalorder %s1094_s3, %s1087_s29 }
  0x51   : > { %p1091_p3 = pneg %p1090_p5  ;;  %p1097_p10 = por %p1096_p9, %p1095_p7 }
  0x53   : > { %p1098_p8 = pnand %p1097_p10, %p1091_p3 }
  0x55   : > { %1101 = shalt.err (!%p1098_p8)
}
  0x56   : > { %940 = dma.hbm_to_vmem [thread:$0]  (!%p1330_p11), %s1328_s23, 128, %s281_s10, %s270_s13  }
  0x57   : > { %p1501_p13 = scmp.ne.s32.totalorder %s1494_s9, 0 }
  0x58   : > { %s1351_s15 = sand.u32 (!%p1501_p13), 1, %s1166_s25   ;;  %p1502_p8 = scmp.ne.s32.totalorder (!%p1501_p13), %s1492_s30, 0 }
  0x59   : > { %289 = sbr.rel (%p1501_p13) target bundleno = 761 (0x2f9), region = 48  ;;  %s743_s12 = sshll.u32 (!%p1501_p13), %s1351_s15, 3 }
  0x5a   : > { %s292_s1 = scalar_lea.sflag (!%p1501_p13), [#allocation3], %s1351_s15  ;;  %s1357_s3 = scalar_lea.vmem (!%p1501_p13), [#allocation2], %s743_s12 }
  0x5e   : > { %1145 = dma.done.wait (%p1502_p8), %s292_s1, 128  }
  0x5f   : > { %1147 = vsyncadd (%p1502_p8), %s292_s1, 4294967168  ;;  %p1503_p10 = scmp.eq.s32.totalorder %s1246_s28, 0 }
  0x61   : > { %1149 = dma.done.wait (%p1503_p10), [#allocation6], 4096   ;;  %p1504_p11 = pmov %p1503_p10 }
  0x62   : > { %p1505_p1 = pmov %p1503_p10 }
  0x63   : > { %1151 = vsyncadd (%p1504_p11), [#allocation6], 4294963200 }
  0x64   : > { %1153 = dma.done.wait (%p1505_p1), [#allocation9], 2048   ;;  %p1506_p2 = pmov %p1505_p1 }
  0x65   : > { %v1182_v0 = vmov 0.0   ;;  %vm1183_vm0 = vmmov 0   ;;  %v354_v1 = vld [vmem:[#allocation5 + $0x78] sm:$0xff]  ;;  %v353_v2 = vld [vmem:[#allocation5 + $0x70] sm:$0xff]  ;;  %v352_v3 = vld [vmem:[#allocation5 + $0x68] sm:$0xff]  ;;  %s752_s22 = sshll.u32 %s1246_s28, 7 }
  0x66   : > { %1155 = vsyncadd (%p1506_p2), [#allocation9], 4294965248  ;;  %806 = vmatprep.subr.mxu0 %v1182_v0  ;;  %838 = vmatprep.mubr.msk.f32.mxu0 %vm1183_vm0, %v1182_v0  ;;  %v351_v4 = vld [vmem:[#allocation5 + $0x60] sm:$0xff]  ;;  %v448_v5 = vld [vmem:[#allocation7 + $0x78] sm:$0xff]  ;;  %s337_s18 = scalar_lea.vmem [#allocation10], %s743_s12  ;;  %s1441_s21 = scalar_lea.hbm %s1485_s7, %s752_s22 }
  0x67   : > { %841 = vmatprep.subr.mxu1 %v1182_v0  ;;  %873 = vmatprep.mubr.msk.f32.mxu1 %vm1183_vm0, %v1182_v0  ;;  %v350_v6 = vld [vmem:[#allocation5 + $0x58] sm:$0xff]  ;;  %v447_v7 = vld [vmem:[#allocation7 + $0x70] sm:$0xff]  ;;  %v446_v8 = vld [vmem:[#allocation7 + $0x68] sm:$0xff]  ;;  %s635_s19 = sshll.u32 %s337_s18, 4  ;;  %s622_s1 = scalar_lea.sflag [#allocation4], %s1351_s15  ;;  %s636_s19 = int_to_ptr.vmem [resolvable:$true] %s635_s19 }
  0x68   : > { %807 = vmatpush3.msra.mxu0 %v354_v1  ;;  %842 = vmatpush3.msra.mxu1 %v448_v5  ;;  %v349_v9 = vld [vmem:[#allocation5 + $0x50] sm:$0xff]  ;;  %v445_v10 = vld [vmem:[#allocation7 + $0x60] sm:$0xff]  ;;  %v348_v11 = vld [vmem:[#allocation5 + $0x48] sm:$0xff]  ;;  %p1507_p6 = scmp.ne.s32.totalorder %s1499_s20, 0  ;;  %s1184_s28 = smov [#allocation10]  }
  0x69   : > { %808 = vmatprep.subr.mxu0 %v1182_v0  ;;  %843 = vmatprep.subr.mxu1 %v1182_v0  ;;  %v444_v12 = vld [vmem:[#allocation7 + $0x58] sm:$0xff]  ;;  %v347_v13 = vld [vmem:[#allocation5 + $0x40] sm:$0xff]  ;;  %v443_v14 = vld [vmem:[#allocation7 + $0x50] sm:$0xff]  ;;  %s1106_s30 = sshll.u32 %s1184_s28, 4  ;;  %s1107_s30 = int_to_ptr.vmem [resolvable:$false] %s1106_s30 }
  0x6a   : > { %809 = vmatpush3.msra.mxu0 %v353_v2  ;;  %844 = vmatpush3.msra.mxu1 %v447_v7  ;;  %v346_v15 = vld [vmem:[#allocation5 + $0x38] sm:$0xff]  ;;  %v442_v16 = vld [vmem:[#allocation7 + $0x48] sm:$0xff]  ;;  %v345_v17 = vld [vmem:[#allocation5 + $0x30] sm:$0xff]  ;;  %s1108_s12 = scalar_lea.vmem %s1107_s30, 256  ;;  %p1109_p5 = scmp.lt.s32.totalorder %s636_s19, %s1107_s30 }
  0x6b   : > { %810 = vmatprep.subr.mxu0 %v1182_v0  ;;  %845 = vmatprep.subr.mxu1 %v1182_v0  ;;  %v344_v18 = vld [vmem:[#allocation5 + $0x28] sm:$0xff]  ;;  %v343_v19 = vld [vmem:[#allocation5 + $0x20] sm:$0xff]  ;;  %v342_v20 = vld [vmem:[#allocation5 + $0x18] sm:$0xff] }
  0x6c   : > { %811 = vmatpush3.msra.mxu0 %v352_v3  ;;  %846 = vmatpush3.msra.mxu1 %v446_v8  ;;  %v341_v21 = vld [vmem:[#allocation5 + $0x10] sm:$0xff]  ;;  %v340_v22 = vld [vmem:[#allocation5 + $0x8] sm:$0xff]  ;;  %v339_v23 = vld [vmem:[#allocation5] sm:$0xff] }
  0x6d   : > { %812 = vmatprep.subr.mxu0 %v1182_v0  ;;  %847 = vmatprep.subr.mxu1 %v1182_v0  ;;  %v338_v24 = vld [vmem:[%s1357_s3] sm:$0xff]  ;;  %v441_v25 = vld [vmem:[#allocation7 + $0x40] sm:$0xff]  ;;  %v438_v28 = vld [vmem:[#allocation7 + $0x28] sm:$0xff]  ;;  %s1102_s3 = scalar_lea.vmem %s636_s19, 128 }
  0x6e   : > { %813 = vmatpush3.msra.mxu0 %v351_v4  ;;  %848 = vmatpush3.msra.mxu1 %v445_v10  ;;  %v440_v26 = vld [vmem:[#allocation7 + $0x38] sm:$0xff]  ;;  %v439_v27 = vld [vmem:[#allocation7 + $0x30] sm:$0xff]  ;;  %v437_v29 = vld [vmem:[#allocation7 + $0x20] sm:$0xff]  ;;  %p1103_p4 = scmp.ne.s32.totalorder %s636_s19, %s1102_s3  ;;  %p1110_p3 = scmp.lt.s32.totalorder %s1108_s12, %s1102_s3 }
  0x6f   : > { %814 = vmatprep.subr.mxu0 %v1182_v0  ;;  %849 = vmatprep.subr.mxu1 %v1182_v0  ;;  %v436_v30 = vld [vmem:[#allocation7 + $0x18] sm:$0xff]  ;;  %v435_v31 = vld [vmem:[#allocation7 + $0x10] sm:$0xff]  ;;  %v434_v32 = vld [vmem:[#allocation7 + $0x8] sm:$0xff] }
  0x70   : > { %815 = vmatpush3.msra.mxu0 %v350_v6  ;;  %850 = vmatpush3.msra.mxu1 %v444_v12  ;;  %v433_v33 = vld [vmem:[#allocation7] sm:$0xff]  ;;  %v542_v34 = vld [vmem:[#allocation8 + $0x78] sm:$0xff]  ;;  %v541_v35 = vld [vmem:[#allocation8 + $0x70] sm:$0xff]  ;;  %p1104_p12 = pnand %p1103_p4, %p1507_p6  ;;  %p1111_p7 = por %p1110_p3, %p1109_p5 }
  0x71   : > { %816 = vmatprep.subr.mxu0 %v1182_v0  ;;  %851 = vmatprep.subr.mxu1 %v1182_v0  ;;  %v540_v36 = vld [vmem:[#allocation8 + $0x68] sm:$0xff]  ;;  %v539_v37 = vld [vmem:[#allocation8 + $0x60] sm:$0xff]  ;;  %v538_v38 = vld [vmem:[#allocation8 + $0x58] sm:$0xff] }
  0x72   : > { %817 = vmatpush3.msra.mxu0 %v349_v9  ;;  %852 = vmatpush3.msra.mxu1 %v443_v14  ;;  %v537_v39 = vld [vmem:[#allocation8 + $0x50] sm:$0xff]  ;;  %v536_v40 = vld [vmem:[#allocation8 + $0x48] sm:$0xff]  ;;  %v535_v46 = vld [vmem:[#allocation8 + $0x40] sm:$0xff]  ;;  %p1105_p0 = pneg %p1104_p12 }
  0x73   : > { %818 = vmatprep.subr.mxu0 %v1182_v0  ;;  %853 = vmatprep.subr.mxu1 %v1182_v0  ;;  %v748_v41 = vld [vmem:[%s1480_s2] ss:$0 sm:$0xff]  ;;  %v534_v47 = vld [vmem:[#allocation8 + $0x38] sm:$0xff]  ;;  %v532_v49 = vld [vmem:[#allocation8 + $0x28] sm:$0xff] }
  0x74   : > { %819 = vmatpush3.msra.mxu0 %v348_v11  ;;  %854 = vmatpush3.msra.mxu1 %v442_v16  ;;  %v533_v48 = vld [vmem:[#allocation8 + $0x30] sm:$0xff]  ;;  %v531_v50 = vld [vmem:[#allocation8 + $0x20] sm:$0xff]  ;;  %v530_v51 = vld [vmem:[#allocation8 + $0x18] sm:$0xff]  ;;  %p1112_p9 = pnand %p1111_p7, %p1105_p0 }
  0x75   : > { %820 = vmatprep.subr.mxu0 %v1182_v0  ;;  %855 = vmatprep.subr.mxu1 %v1182_v0  ;;  %v529_v52 = vld [vmem:[#allocation8 + $0x10] sm:$0xff]  ;;  %v528_v53 = vld [vmem:[#allocation8 + $0x8] sm:$0xff]  ;;  %v527_v54 = vld [vmem:[#allocation8] sm:$0xff] }
  0x76   : > { %821 = vmatpush3.msra.mxu0 %v347_v13  ;;  %856 = vmatpush3.msra.mxu1 %v441_v25  ;;  %v749_v55 = vld [vmem:[%s1482_s4] ss:$0 sm:$0xff] }
  0x77   : > { %822 = vmatprep.subr.mxu0 %v1182_v0  ;;  %857 = vmatprep.subr.mxu1 %v1182_v0  ;;  %v750_v60 = vld [vmem:[%s1484_s6] ss:$0 sm:$0xff] }
  0x78   : > { %823 = vmatpush3.msra.mxu0 %v346_v15  ;;  %858 = vmatpush3.msra.mxu1 %v440_v26 }
  0x79   : > { %824 = vmatprep.subr.mxu0 %v1182_v0  ;;  %859 = vmatprep.subr.mxu1 %v1182_v0 }
  0x7a   : > { %825 = vmatpush3.msra.mxu0 %v345_v17  ;;  %860 = vmatpush3.msra.mxu1 %v439_v27 }
  0x7b   : > { %826 = vmatprep.subr.mxu0 %v1182_v0  ;;  %861 = vmatprep.subr.mxu1 %v1182_v0 }
  0x7c   : > { %827 = vmatpush3.msra.mxu0 %v344_v18  ;;  %862 = vmatpush3.msra.mxu1 %v438_v28 }
  0x7d   : > { %828 = vmatprep.subr.mxu0 %v1182_v0  ;;  %863 = vmatprep.subr.mxu1 %v1182_v0 }
  0x7e   : > { %829 = vmatpush3.msra.mxu0 %v343_v19  ;;  %864 = vmatpush3.msra.mxu1 %v437_v29 }
  0x7f   : > { %830 = vmatprep.subr.mxu0 %v1182_v0  ;;  %865 = vmatprep.subr.mxu1 %v1182_v0 }
  0x80   : > { %831 = vmatpush3.msra.mxu0 %v342_v20  ;;  %866 = vmatpush3.msra.mxu1 %v436_v30 }
  0x81   : > { %832 = vmatprep.subr.mxu0 %v1182_v0  ;;  %867 = vmatprep.subr.mxu1 %v1182_v0 }
  0x82   : > { %833 = vmatpush3.msra.mxu0 %v341_v21  ;;  %868 = vmatpush3.msra.mxu1 %v435_v31 }
  0x83   : > { %834 = vmatprep.subr.mxu0 %v1182_v0  ;;  %869 = vmatprep.subr.mxu1 %v1182_v0 }
  0x84   : > { %835 = vmatpush3.msra.mxu0 %v340_v22  ;;  %870 = vmatpush3.msra.mxu1 %v434_v32 }
  0x85   : > { %836 = vmatprep.subr.mxu0 %v1182_v0  ;;  %871 = vmatprep.subr.mxu1 %v1182_v0 }
  0x86   : > { %837 = vmatpush3.msra.mxu0 %v339_v23  ;;  %872 = vmatpush3.msra.mxu1 %v433_v33 }
  0x87   : > { %839 = vmatmul.mubr.f32.vlgmr.msra.gmra.mxu0 %v338_v24  ;;  %876 = vmatprep.subr.mxu0 %v1182_v0 }
  0x88   : > { %908 = vmatprep.mubr.msk.f32.mxu0 %vm1183_vm0, %v1182_v0  ;;  %877 = vmatpush3.msra.mxu0 %v542_v34 }
  0x89   : > { %878 = vmatprep.subr.mxu0 %v1182_v0 }
  0x8a   : > { %879 = vmatpush3.msra.mxu0 %v541_v35 }
  0x8b   : > { %880 = vmatprep.subr.mxu0 %v1182_v0 }
  0x8c   : > { %881 = vmatpush3.msra.mxu0 %v540_v36 }
  0x8d   : > { %882 = vmatprep.subr.mxu0 %v1182_v0 }
  0x8e   : > { %883 = vmatpush3.msra.mxu0 %v539_v37 }
  0x8f   : > { %884 = vmatprep.subr.mxu0 %v1182_v0 }
  0x90   : > { %885 = vmatpush3.msra.mxu0 %v538_v38 }
  0x91   : > { %886 = vmatprep.subr.mxu0 %v1182_v0 }
  0x92   : > { %887 = vmatpush3.msra.mxu0 %v537_v39 }
  0x93   : > { %888 = vmatprep.subr.mxu0 %v1182_v0 }
  0x94   : > { %889 = vmatpush3.msra.mxu0 %v536_v40 }
  0x95   : > { %890 = vmatprep.subr.mxu0 %v1182_v0 }
  0x96   : > { %891 = vmatpush3.msra.mxu0 %v535_v46 }
  0x97   : > { %892 = vmatprep.subr.mxu0 %v1182_v0 }
  0x98   : > { %893 = vmatpush3.msra.mxu0 %v534_v47 }
  0x99   : > { %894 = vmatprep.subr.mxu0 %v1182_v0 }
  0x9a   : > { %895 = vmatpush3.msra.mxu0 %v533_v48 }
  0x9b   : > { %896 = vmatprep.subr.mxu0 %v1182_v0 }
  0x9c   : > { %897 = vmatpush3.msra.mxu0 %v532_v49 }
  0x9d   : > { %898 = vmatprep.subr.mxu0 %v1182_v0 }
  0x9e   : > { %899 = vmatpush3.msra.mxu0 %v531_v50 }
  0x9f   : > { %900 = vmatprep.subr.mxu0 %v1182_v0 }
  0xa0   : > { %901 = vmatpush3.msra.mxu0 %v530_v51 }
  0xa1   : > { %902 = vmatprep.subr.mxu0 %v1182_v0 }
  0xa2   : > { %903 = vmatpush3.msra.mxu0 %v529_v52 }
  0xa3   : > { %904 = vmatprep.subr.mxu0 %v1182_v0 }
  0xa4   : > { %905 = vmatpush3.msra.mxu0 %v528_v53 }
  0xa5   : > { %906 = vmatprep.subr.mxu0 %v1182_v0 }
  0xa6   : > { %907 = vmatpush3.msra.mxu0 %v527_v54 }
 0x147   : > { %v428_v42 = vpop.f32.mrf.mxu0 }
 0x148   : > { %v429_v43 = vadd.f32 %v748_v41, %v428_v42 }
 0x149   : > { %v840_v44 = vpop.f32.mrf.mxu0 }
 0x14a   : > { %992 = vtanh.f32 %v429_v43 }
 0x157   : > { %v993_v45 = vpop.eup %992 }
 0x158   : > { %874 = vmatmul.mubr.f32.vlgmr.msra.gmra.mxu1 %v993_v45 }
 0x218   : > { %v522_v56 = vpop.f32.mrf.mxu1 }
 0x219   : > { %v523_v57 = vadd.f32 %v749_v55, %v522_v56 }
 0x21a   : > { %v875_v58 = vpop.f32.mrf.mxu1 }
 0x21b   : > { %994 = vtanh.f32 %v523_v57 }
 0x228   : > { %v995_v59 = vpop.eup %994 }
 0x229   : > { %909 = vmatmul.mubr.f32.vlgmr.msra.gmra.mxu0 %v995_v59 }
 0x2e9   : > { %v616_v61 = vpop.f32.mrf.mxu0 }
 0x2ea   : > { %v617_v62 = vadd.f32 %v750_v60, %v616_v61 }
 0x2eb   : > { %v910_v63 = vpop.f32.mrf.mxu0 }
 0x2ec   : > { %620 = vst [vmem:[%s337_s18] sm:$0xff] %v617_v62 }
 0x2ed   : > { %1115 = shalt.err (!%p1112_p9)
}
 0x2ee   : > { %s1116_s9 = scalar_lea.hbm %s1441_s21, 128  ;;  %s1120_s10 = scalar_lea.hbm %s1485_s7, 256 }
 0x2ef   : > { %p1117_p13 = scmp.ne.s32.totalorder %s1441_s21, %s1116_s9  ;;  %p1121_p11 = scmp.lt.s32.totalorder %s1441_s21, %s1485_s7 }
 0x2f0   : > { %p1122_p1 = scmp.lt.s32.totalorder %s1120_s10, %s1116_s9 }
 0x2f1   : > { %p1118_p8 = pnand %p1117_p13, %p1507_p6 }
 0x2f2   : > { %p1123_p2 = por %p1122_p1, %p1121_p11 }
 0x2f3   : > { %p1119_p10 = pneg %p1118_p8 }
 0x2f5   : > { %p1124_p4 = pnand %p1123_p2, %p1119_p10 }
 0x2f7   : > { %1127 = shalt.err (!%p1124_p4)
}
 0x2f8   : > { %925 = dma.vmem_to_hbm [thread:$0]  (%p1507_p6), %s636_s19, 128, %s1441_s21, %s622_s1  }
 0x2f9 PF: > { %s647_s22 = sand.u32 1, %s1162_s24   ;;  %p1508_p12 = scmp.ne.s32.totalorder %s1493_s8, 0 }
 0x2fa   : > { %p1509_p0 = scmp.ge.s32.totalorder %s1174_s27, 2  ;;  %s648_s18 = scalar_lea.sflag [#allocation4], %s647_s22 }
 0x2fc   : > { %p942_p5 = pnand %p1509_p0, %p1508_p12 }
 0x2fe   : > { %p943_p3 = pneg %p942_p5 }
 0x300   : > { %1157 = dma.done.wait (%p943_p3), %s648_s18, 128  }
 0x301   : > { %1159 = vsyncadd (%p943_p3), %s648_s18, 4294967168  ;;  %p22_p7 = scmp.ge.s32.totalorder %s1305_s14, 4   ;;  %s1510_s24 = smov %s1166_s25 }
 0x302   : > { %s1511_s25 = smov %s1170_s26  ;;  %s1512_s26 = smov %s1315_s17 }
 0x303   : > { %s1513_s27 = smov %s1305_s14  ;;  %24 = sbr.rel (!%p22_p7) target bundleno = 10 (0xa), region = 105 }
 0x308   :  { %653 = vsyncpa [#allocation3], 1 }
 0x309   :  { %655 = vsyncpa [#allocation3 + $0x1], 1 }
 0x30a   :  { %656 = vsyncpa [#allocation6], 1 }
 0x30b   :  { %657 = vsyncpa [#allocation9], 1 }
 0x30c   :  { %658 = vsyncpa [#allocation4], 1 }
 0x30d   :  { %660 = vsyncpa [#allocation4 + $0x1], 1 }

</bundles_post_ra>
